<compile_context>
chip_gen: v5e
topology: v5e:2x2
jax: 0.10.0
libtpu: 0.0.40
codegen_flags: <defaults>
</compile_context>

<pallas_src>
import functools

import jax
import jax.numpy as jnp
from jax import lax
from jax.experimental import pallas as pl
from jax.experimental.pallas import tpu as pltpu


def _round_up(x, m):
    return ((x + m - 1) // m) * m


def _tpu_generation():
    """Best-effort TPU generation from device_kind; 0 if unknown."""
    try:
        kind = jax.devices()[0].device_kind.lower()
    except Exception:
        return 0
    for g in (7, 6, 5, 4):
        if "v%d" % g in kind:
            return g
    return 0


def _ce_label_smooth_kernel(x_ref, t_ref, out_ref, acc_ref, *,
                            epsilon, num_classes, batch, block_rows,
                            tiles_per_part, needs_mask, targets_resident,
                            use_mxu_reductions, native_max):
    p = pl.program_id(0)          # partition (parallel axis, v7x megacore)
    t = pl.program_id(1)          # row-tile within partition (reduction axis)

    @pl.when(t == 0)
    def _init():
        acc_ref[...] = jnp.zeros_like(acc_ref)

    tile_idx = p * tiles_per_part + t
    row0 = pl.multiple_of(tile_idx * block_rows, 8)

    xn = x_ref[...]                                            # (TB, C) native
    if native_max:
        # v6e/v7x: bf16 max on the VPU/XLU halves vreg traffic for the max
        # pass; exp/log path stays in f32.
        m = jnp.max(xn, axis=1, keepdims=True).astype(jnp.float32)
    else:
        m = jnp.max(xn.astype(jnp.float32), axis=1, keepdims=True)
    shifted = xn.astype(jnp.float32) - m                       # (TB, C) f32

    if targets_resident:
        labels = t_ref[pl.ds(row0, block_rows), :]             # (TB, 1) int32
    else:
        labels = t_ref[...]                                    # (TB, 1) int32

    col = lax.broadcasted_iota(jnp.int32, (block_rows, num_classes), 1)
    is_target = col == labels                                  # (TB, C) bool

    if use_mxu_reductions:
        # Exact (f32, XLU) reduction for the numerically dominant one-hot
        # term; the two wide row-sums go to the otherwise-idle MXU as dots
        # against a constant ones operand, keeping the XLU free.
        target_term = jnp.sum(jnp.where(is_target, shifted, 0.0),
                              axis=1, keepdims=True)           # (TB, 1)
        ones_rhs = jnp.ones((num_classes, 128), jnp.float32)
        row_sum = jnp.dot(shifted, ones_rhs,
                          preferred_element_type=jnp.float32)  # (TB, 128)
        sum_exp = jnp.dot(jnp.exp(shifted), ones_rhs,
                          preferred_element_type=jnp.float32)  # (TB, 128)
        contrib = ((1.0 - epsilon) * target_term
                   + (epsilon / num_classes) * row_sum
                   - jnp.log(sum_exp))                         # (TB, 128)
    else:
        # Large-C fallback: merged single weighted lane reduction (3 XLU
        # reduces), no (C, 128) ones constant resident in VMEM.
        on_w = jnp.float32(1.0 - epsilon + epsilon / num_classes)
        off_w = jnp.float32(epsilon / num_classes)
        w_sum = jnp.sum(jnp.where(is_target, on_w, off_w) * shifted,
                        axis=1, keepdims=True)                 # (TB, 1)
        lse = jnp.log(jnp.sum(jnp.exp(shifted), axis=1, keepdims=True))
        contrib = w_sum - lse                                  # (TB, 1)

    if needs_mask:
        # Only emitted when a partial / overhang tile can exist.
        rows = row0 + lax.broadcasted_iota(jnp.int32, (block_rows, 1), 0)
        contrib = jnp.where(rows < batch, contrib, 0.0)

    # Vector-domain accumulation: fold the row tile into the (8, 128) VMEM
    # accumulator with pure VPU adds (no per-step XLU->scalar reduce, no SMEM
    # read-modify-write on the loop-carried path).
    lane = contrib.shape[1]
    acc_ref[...] += jnp.sum(contrib.reshape(block_rows // 8, 8, lane), axis=0)

    # Finalize once per partition: collapse to a scalar, negate, divide by
    # the *full* batch, broadcast into the lane-dense output block.
    @pl.when(t == pl.num_programs(1) - 1)
    def _finalize():
        total = jnp.sum(acc_ref[...][:, :1])       # lanes hold identical sums
        out_ref[...] = jnp.full((1, 8, 128), -total / batch, dtype=jnp.float32)


def cross_entropy_label_smooth(inputs, targets, num_classes, epsilon=0.1,
                               block_rows=None, parts=None):
    """inputs: (B, C) float logits (f32 or bf16); targets: (B,) int labels.

    Returns the scalar label-smoothed cross-entropy loss (float32).
    """
    B, C = inputs.shape
    assert C == num_classes

    # ---- generation-aware budgets -------------------------------------------
    gen = _tpu_generation()
    if gen >= 7:                      # v7x: 64 MiB VMEM/core, 2 TCs/chip
        budget_bytes = 4 << 20
        vmem_limit = 48 << 20
        default_parts = 2
    elif gen in (5, 6):               # v5e/v6e: 128 MiB VMEM, 1 TC/chip
        budget_bytes = 8 << 20
        vmem_limit = 64 << 20
        default_parts = 1
    else:                             # unknown chip: conservative
        budget_bytes = 4 << 20
        vmem_limit = 32 << 20
        default_parts = 1
    if parts is None:
        parts = default_parts

    # ---- row tile: lane-dense (full C) blocks, batch on sublanes ------------
    itemsize = jnp.dtype(inputs.dtype).itemsize
    auto_rows = block_rows is None
    if auto_rows:
        block_rows = budget_bytes // max(1, C * itemsize)
    block_rows = int(block_rows)
    block_rows = max(8, min(8192, block_rows))
    block_rows = (block_rows // 8) * 8
    block_rows = min(block_rows, _round_up(B, 8))
    if auto_rows and parts == 2 and B > 8:
        # v7x: guarantee >= 2 row tiles so both TensorCores get work.
        block_rows = min(block_rows, _round_up(pl.cdiv(B, 2), 8))

    num_tiles = pl.cdiv(B, block_rows)
    if num_tiles < 2:
        parts = 1
    tiles_per_part = pl.cdiv(num_tiles, parts)
    padded_rows = parts * tiles_per_part * block_rows
    needs_mask = padded_rows != B
    has_overhang = parts * tiles_per_part != num_tiles

    # MXU offload of the row-sums only while the (C, 128) ones operand is a
    # small VMEM constant; huge-C shapes fall back to the merged XLU reduce.
    use_mxu_reductions = C <= 4096

    # ---- targets: VMEM-resident when tiny, per-tile blocks otherwise --------
    targets_resident = padded_rows <= 2048
    t2d = targets.reshape(B, 1).astype(jnp.int32)

    def tile_index_map(pi, ti):
        idx = pi * tiles_per_part + ti
        if has_overhang:
            # Overhang tiles (v7x odd-tile split) re-read the last real block
            # and are fully masked in-kernel.
            idx = jnp.minimum(idx, num_tiles - 1)
        return (idx, 0)

    if targets_resident:
        if padded_rows > B:
            t2d = jnp.pad(t2d, ((0, padded_rows - B), (0, 0)))
        t_spec = pl.BlockSpec((padded_rows, 1), lambda pi, ti: (0, 0))
    else:
        t_spec = pl.BlockSpec((block_rows, 1), tile_index_map)

    kernel = functools.partial(
        _ce_label_smooth_kernel,
        epsilon=float(epsilon),
        num_classes=num_classes,
        batch=B,
        block_rows=block_rows,
        tiles_per_part=tiles_per_part,
        needs_mask=needs_mask,
        targets_resident=targets_resident,
        use_mxu_reductions=use_mxu_reductions,
        native_max=(gen >= 6),
    )

    partials = pl.pallas_call(
        kernel,
        out_shape=jax.ShapeDtypeStruct((parts, 8, 128), jnp.float32),
        grid_spec=pltpu.PrefetchScalarGridSpec(
            num_scalar_prefetch=0,
            grid=(parts, tiles_per_part),
            in_specs=[
                pl.BlockSpec((block_rows, C), tile_index_map),
                t_spec,
            ],
            out_specs=pl.BlockSpec((1, 8, 128), lambda pi, ti: (pi, 0, 0)),
            scratch_shapes=[pltpu.VMEM((8, 128), jnp.float32)],
        ),
        compiler_params=pltpu.CompilerParams(
            dimension_semantics=("parallel", "arbitrary"),
            vmem_limit_bytes=vmem_limit,
        ),
    )(inputs, t2d)

    # Each partition already carries the -1/B factor; just add the partials.
    return jnp.sum(partials[:, 0, 0])


def _reference(logits, labels, num_classes, epsilon):
    x = logits.astype(jnp.float32)
    lp = jax.nn.log_softmax(x, axis=1)
    oh = jax.nn.one_hot(labels, num_classes, dtype=jnp.float32)
    sm = (1.0 - epsilon) * oh + epsilon / num_classes
    return jnp.sum(jnp.mean(-sm * lp, axis=0))


if __name__ == "__main__":
    key = jax.random.PRNGKey(0)
    epsilon = 0.1

    def run_check(B, C, dtype, block_rows=None, parts=None):
        k1, k2 = jax.random.split(jax.random.fold_in(key, B * 131 + C))
        logits = jax.random.normal(k1, (B, C), dtype=jnp.float32).astype(dtype)
        labels = jax.random.randint(k2, (B,), 0, C, dtype=jnp.int32)
        loss = cross_entropy_label_smooth(
            logits, labels, num_classes=C, epsilon=epsilon,
            block_rows=block_rows, parts=parts)
        loss = jax.block_until_ready(loss)
        ref = _reference(logits, labels, C, epsilon)
        # Tolerance leaves headroom for the MXU f32 pass decomposition of the
        # row-sum dots; real formula/indexing bugs would be >1e-2 off.
        assert jnp.allclose(loss, ref, rtol=1e-4, atol=2e-4), (
            B, C, str(dtype), float(loss), float(ref))

    # single tile, f32, auto tile size
    run_check(16, 128, jnp.float32)
    # multi-tile accumulation + partial-last-tile row masking (B % TB != 0)
    run_check(40, 128, jnp.float32, block_rows=16)
    # bf16 input DMA, even tile count, forced 2-way partition split
    run_check(64, 128, jnp.bfloat16, block_rows=16, parts=2)
    # odd tile count with forced 2-way split: clamped + fully-masked overhang
    run_check(40, 128, jnp.float32, block_rows=16, parts=2)
    # num_classes not a multiple of the 128-lane width
    run_check(24, 200, jnp.float32)

    print("KERNEL_OK")
</pallas_src>

<mosaic_0001>
module attributes {stable_mosaic.version = 11 : i64} {
  func.func @_ce_label_smooth_kernel(%arg0: i32, %arg1: i32, %arg2: memref<16x128xf32, #tpu.memory_space<vmem>>, %arg3: memref<16x1xi32, #tpu.memory_space<vmem>>, %arg4: memref<1x8x128xf32, #tpu.memory_space<vmem>>, %arg5: memref<8x128xf32, #tpu.memory_space<vmem>>) attributes {dimension_semantics = [#tpu.dimension_semantics<parallel>, #tpu.dimension_semantics<arbitrary>], iteration_bounds = array<i64: 1, 1>, scalar_prefetch = 0 : i64, scratch_operands = 1 : i64, tpu.core_type = #tpu.core_type<tc>, window_params = [{transform_indices = @transform_0, window_bounds = array<i64: 16, 128>}, {pipeline_mode = #tpu.pipeline_mode<synchronous>, transform_indices = @transform_1, window_bounds = array<i64: 16, 1>}, {transform_indices = @transform_2, window_bounds = array<i64: 1, 8, 128>}]} {
    %c0_i32 = arith.constant 0 : i32
    %0 = arith.cmpi eq, %arg1, %c0_i32 : i32
    %1 = arith.extui %0 : i1 to i32
    %c0_i32_0 = arith.constant 0 : i32
    %2 = arith.cmpi ne, %1, %c0_i32_0 : i32
    scf.if %2 {
      %cst_17 = arith.constant 0.000000e+00 : f32
      %41 = vector.broadcast %cst_17 : f32 to vector<8x128xf32>
      %c0_18 = arith.constant 0 : index
      %c0_19 = arith.constant 0 : index
      %42 = vector.load %arg5[%c0_18, %c0_19] : memref<8x128xf32, #tpu.memory_space<vmem>>, vector<8x128xf32>
      tpu.vector_store %arg5[%c0_18, %c0_19], %41 {strides = array<i32>} : memref<8x128xf32, #tpu.memory_space<vmem>>, vector<8x128xf32>,
    } else {
    }
    %c1_i32 = arith.constant 1 : i32
    %3 = arith.muli %arg0, %c1_i32 : i32
    %4 = arith.addi %3, %arg1 : i32
    %c16_i32 = arith.constant 16 : i32
    %5 = arith.muli %4, %c16_i32 : i32
    %6 = tpu.assume_multiple %5, 8 : i32
    %c0 = arith.constant 0 : index
    %c0_1 = arith.constant 0 : index
    %7 = vector.load %arg2[%c0, %c0_1] : memref<16x128xf32, #tpu.memory_space<vmem>>, vector<16x128xf32>
    %cst = arith.constant dense<0xFF800000> : vector<16xf32>
    %8 = vector.multi_reduction <maximumf>, %7, %cst [1] : vector<16x128xf32> to vector<16xf32>
    %9 = vector.shape_cast %8 : vector<16xf32> to vector<16x1xf32>
    %10 = vector.broadcast %9 : vector<16x1xf32> to vector<16x128xf32>
    %11 = arith.subf %7, %10 : vector<16x128xf32>
    %12 = arith.index_cast %6 : i32 to index
    %c0_2 = arith.constant 0 : index
    %13 = vector.load %arg3[%12, %c0_2] : memref<16x1xi32, #tpu.memory_space<vmem>>, vector<16x1xi32>
    %14 = tpu.iota {dimensions = array<i32: 1>} : vector<16x128xi32>
    %15 = vector.broadcast %13 : vector<16x1xi32> to vector<16x128xi32>
    %16 = arith.cmpi eq, %14, %15 : vector<16x128xi32>
    %cst_3 = arith.constant 0.000000e+00 : f32
    %17 = vector.broadcast %cst_3 : f32 to vector<16x128xf32>
    %18 = arith.select %16, %11, %17 : vector<16x128xi1>, vector<16x128xf32>
    %cst_4 = arith.constant dense<0.000000e+00> : vector<16xf32>
    %19 = vector.multi_reduction <add>, %18, %cst_4 [1] : vector<16x128xf32> to vector<16xf32>
    %20 = vector.shape_cast %19 : vector<16xf32> to vector<16x1xf32>
    %cst_5 = arith.constant 1.000000e+00 : f32
    %21 = vector.broadcast %cst_5 : f32 to vector<128x128xf32>
    %cst_6 = arith.constant dense<0.000000e+00> : vector<16x128xf32>
    %22 = tpu.matmul %11, %21, %cst_6 {dimension_numbers = #tpu.dot_dimension_numbers<[1], [0], [0], [1], [0, 0, 1, 1], [], []>} : vector<16x128xf32>, vector<128x128xf32>, vector<16x128xf32> -> vector<16x128xf32>
    %23 = math.exp %11 : vector<16x128xf32>
    %cst_7 = arith.constant dense<0.000000e+00> : vector<16x128xf32>
    %24 = tpu.matmul %23, %21, %cst_7 {dimension_numbers = #tpu.dot_dimension_numbers<[1], [0], [0], [1], [0, 0, 1, 1], [], []>} : vector<16x128xf32>, vector<128x128xf32>, vector<16x128xf32> -> vector<16x128xf32>
    %cst_8 = arith.constant 0.899999976 : f32
    %25 = vector.broadcast %cst_8 : f32 to vector<16x1xf32>
    %26 = arith.mulf %25, %20 : vector<16x1xf32>
    %cst_9 = arith.constant 7.812500e-04 : f32
    %27 = vector.broadcast %cst_9 : f32 to vector<16x128xf32>
    %28 = arith.mulf %27, %22 : vector<16x128xf32>
    %29 = vector.broadcast %26 : vector<16x1xf32> to vector<16x128xf32>
    %30 = arith.addf %29, %28 : vector<16x128xf32>
    %31 = math.log %24 : vector<16x128xf32>
    %32 = arith.subf %30, %31 : vector<16x128xf32>
    %c0_10 = arith.constant 0 : index
    %c0_11 = arith.constant 0 : index
    %33 = vector.load %arg5[%c0_10, %c0_11] : memref<8x128xf32, #tpu.memory_space<vmem>>, vector<8x128xf32>
    %34 = vector.shape_cast %32 : vector<16x128xf32> to vector<2x8x128xf32>
    %cst_12 = arith.constant dense<0.000000e+00> : vector<8x128xf32>
    %35 = vector.multi_reduction <add>, %34, %cst_12 [0] : vector<2x8x128xf32> to vector<8x128xf32>
    %36 = arith.addf %33, %35 : vector<8x128xf32>
    %c0_13 = arith.constant 0 : index
    %c0_14 = arith.constant 0 : index
    %37 = vector.load %arg5[%c0_13, %c0_14] : memref<8x128xf32, #tpu.memory_space<vmem>>, vector<8x128xf32>
    tpu.vector_store %arg5[%c0_13, %c0_14], %36 {strides = array<i32>} : memref<8x128xf32, #tpu.memory_space<vmem>>, vector<8x128xf32>,
    %c0_i32_15 = arith.constant 0 : i32
    %38 = arith.cmpi eq, %arg1, %c0_i32_15 : i32
    %39 = arith.extui %38 : i1 to i32
    %c0_i32_16 = arith.constant 0 : i32
    %40 = arith.cmpi ne, %39, %c0_i32_16 : i32
    scf.if %40 {
      %c0_17 = arith.constant 0 : index
      %c0_18 = arith.constant 0 : index
      %41 = vector.load %arg5[%c0_17, %c0_18] : memref<8x128xf32, #tpu.memory_space<vmem>>, vector<8x128xf32>
      %42 = vector.extract_strided_slice %41 {offsets = [0, 0], sizes = [8, 1], strides = [1, 1]} : vector<8x128xf32> to vector<8x1xf32>
      %43 = vector.shape_cast %42 : vector<8x1xf32> to vector<1x8x1xf32>
      %cst_19 = arith.constant dense<0.000000e+00> : vector<1xf32>
      %44 = vector.multi_reduction <add>, %43, %cst_19 [1, 2] : vector<1x8x1xf32> to vector<1xf32>
      %45 = vector.shape_cast %44 : vector<1xf32> to vector<1x1x1xf32>
      %46 = vector.extract %45[0, 0, 0] : f32 from vector<1x1x1xf32>
      %cst_20 = arith.constant 0.000000e+00 : f32
      %47 = arith.subf %cst_20, %46 : f32
      %cst_21 = arith.constant 1.600000e+01 : f32
      %48 = arith.divf %47, %cst_21 : f32
      %49 = vector.broadcast %48 : f32 to vector<1x8x128xf32>
      %c0_22 = arith.constant 0 : index
      %c0_23 = arith.constant 0 : index
      %c0_24 = arith.constant 0 : index
      %50 = vector.load %arg4[%c0_22, %c0_23, %c0_24] : memref<1x8x128xf32, #tpu.memory_space<vmem>>, vector<1x8x128xf32>
      tpu.vector_store %arg4[%c0_22, %c0_23, %c0_24], %49 {strides = array<i32>} : memref<1x8x128xf32, #tpu.memory_space<vmem>>, vector<1x8x128xf32>,
    } else {
    }
    return
  }
  func.func @transform_0(%arg0: i32, %arg1: i32) -> (i32, i32) {
    %c1_i32 = arith.constant 1 : i32
    %0 = arith.muli %arg0, %c1_i32 : i32
    %1 = arith.addi %0, %arg1 : i32
    %c0_i32 = arith.constant 0 : i32
    %c0_i32_0 = arith.constant 0 : i32
    return %1, %c0_i32 : i32, i32
  }
  func.func @transform_1(%arg0: i32, %arg1: i32) -> (i32, i32) {
    %c0_i32 = arith.constant 0 : i32
    %c0_i32_0 = arith.constant 0 : i32
    %c0_i32_1 = arith.constant 0 : i32
    return %c0_i32, %c0_i32_0 : i32, i32
  }
  func.func @transform_2(%arg0: i32, %arg1: i32) -> (i32, i32, i32) {
    %c0_i32 = arith.constant 0 : i32
    %c0_i32_0 = arith.constant 0 : i32
    %c0_i32_1 = arith.constant 0 : i32
    return %arg0, %c0_i32, %c0_i32_0 : i32, i32, i32
  }
}

</mosaic_0001>

<bundles_post_ra>
// kernel: tpu_custom_call.1
= control target key start
LH: loop header
LB: loop body
LE: loop exit
PB: predicated region body
PF: predicated region fallthrough
CT: control target
= control target key end

     0   :  { %v261_v2 = vmov 0   ;;  %s369_s0 = inlined_call_operand.vmem [shape: f32[16,128], index: 0, kind: input, shape index: {}]   ;;  %s370_s1 = inlined_call_operand.vmem [shape: s32[16,1], index: 1, kind: input, shape index: {}]   ;;  %s371_s2 = inlined_call_operand.hbm [shape: f32[1,8,128], index: 2, kind: output, shape index: {}]  }
   0x1   :  { %v283_v0 = vld [vmem:[%s369_s0 + $0x8] sm:$0xff]  ;;  %v50_v1 = vld [vmem:[%s370_s1] sm:$0xff]  ;;  %223 = vset.pattern.permute.xlu1 %v261_v2 }
   0x2   :  { %45 = vmax.xlane.f32.xlu0 %v283_v0 }
   0x3   :  { %7 = vsyncpa [#allocation4], 0  ;;  %55 = vperm.xlu1 %223, %v50_v1   ;;  %v262_v3 = vmov 1.0   ;;  %v300_v4 = vld [vmem:[%s369_s0] sm:$0xff]  ;;  %v51_v5 = vld [vmem:[%s370_s1 + $0x8] sm:$0xff]  ;;  %224 = vset.pattern.permute.xlu0 %v261_v2  ;;  %v52_v6 = vlaneseq  ;;  %vm138_vm2 = vcmask 7168  }
   0x4   :  { %183 = vmatpush.msra.mxu2 %v262_v3  ;;  %68 = vmatpush.msra.mxu0 %v262_v3  ;;  %v263_v40 = vmov 16.0   ;;  %s264_s0 = smov [#allocation3]   ;;  %s168_s20 = sshll.u32 %s371_s2, 4  ;;  %s169_s20 = int_to_ptr.hbm [resolvable:$true] %s168_s20 }
   0x5   :  { %199 = vmatpush.msra.mxu3 %v262_v3  ;;  %95 = vmatpush.msra.mxu1 %v262_v3  ;;  %v53_v11 = vand.u32 127, %v52_v6  ;;  %s166_s1 = sshll.u32 %s264_s0, 4  ;;  %s167_s1 = int_to_ptr.vmem [resolvable:$true] %s166_s1 }
   0x6   :  { %184 = vmatpush.msra.mxu2 %v262_v3  ;;  %69 = vmatpush.msra.mxu0 %v262_v3 }
   0x7   :  { %200 = vmatpush.msra.mxu3 %v262_v3  ;;  %96 = vmatpush.msra.mxu1 %v262_v3 }
   0x8   :  { %185 = vmatpush.msra.mxu2 %v262_v3  ;;  %70 = vmatpush.msra.mxu0 %v262_v3 }
   0x9   :  { %201 = vmatpush.msra.mxu3 %v262_v3  ;;  %97 = vmatpush.msra.mxu1 %v262_v3 }
   0xa   :  { %186 = vmatpush.msra.mxu2 %v262_v3  ;;  %43 = vmax.xlane.f32.xlu0 %v300_v4 }
   0xb   :  { %71 = vmatpush.msra.mxu0 %v262_v3  ;;  %58 = vperm.xlu1 %223, %v51_v5  }
   0xc   :  { %187 = vmatpush.msra.mxu2 %v262_v3  ;;  %202 = vmatpush.msra.mxu3 %v262_v3 }
   0xd   :  { %72 = vmatpush.msra.mxu0 %v262_v3  ;;  %98 = vmatpush.msra.mxu1 %v262_v3 }
   0xe   :  { %188 = vmatpush.msra.mxu2 %v262_v3  ;;  %203 = vmatpush.msra.mxu3 %v262_v3 }
   0xf   :  { %73 = vmatpush.msra.mxu0 %v262_v3  ;;  %99 = vmatpush.msra.mxu1 %v262_v3 }
  0x10   :  { %189 = vmatpush.msra.mxu2 %v262_v3  ;;  %204 = vmatpush.msra.mxu3 %v262_v3 }
  0x11   :  { %74 = vmatpush.msra.mxu0 %v262_v3  ;;  %100 = vmatpush.msra.mxu1 %v262_v3 }
  0x12   :  { %190 = vmatpush.msra.mxu2 %v262_v3  ;;  %205 = vmatpush.msra.mxu3 %v262_v3 }
  0x13   :  { %75 = vmatpush.msra.mxu0 %v262_v3  ;;  %101 = vmatpush.msra.mxu1 %v262_v3 }
  0x14   :  { %191 = vmatpush.msra.mxu2 %v262_v3  ;;  %206 = vmatpush.msra.mxu3 %v262_v3 }
  0x15   :  { %76 = vmatpush.msra.mxu0 %v262_v3  ;;  %102 = vmatpush.msra.mxu1 %v262_v3 }
  0x16   :  { %192 = vmatpush.msra.mxu2 %v262_v3  ;;  %207 = vmatpush.msra.mxu3 %v262_v3 }
  0x17   :  { %77 = vmatpush.msra.mxu0 %v262_v3  ;;  %103 = vmatpush.msra.mxu1 %v262_v3 }
  0x18   :  { %193 = vmatpush.msra.mxu2 %v262_v3  ;;  %208 = vmatpush.msra.mxu3 %v262_v3 }
  0x19   :  { %78 = vmatpush.msra.mxu0 %v262_v3  ;;  %104 = vmatpush.msra.mxu1 %v262_v3 }
  0x1a   :  { %194 = vmatpush.msra.mxu2 %v262_v3  ;;  %209 = vmatpush.msra.mxu3 %v262_v3 }
  0x1b   :  { %79 = vmatpush.msra.mxu0 %v262_v3  ;;  %105 = vmatpush.msra.mxu1 %v262_v3 }
  0x1c   :  { %195 = vmatpush.msra.mxu2 %v262_v3  ;;  %210 = vmatpush.msra.mxu3 %v262_v3 }
  0x1d   :  { %80 = vmatpush.msra.mxu0 %v262_v3  ;;  %106 = vmatpush.msra.mxu1 %v262_v3 }
  0x1e   :  { %196 = vmatpush.msra.mxu2 %v262_v3  ;;  %211 = vmatpush.msra.mxu3 %v262_v3 }
  0x1f   :  { %81 = vmatpush.msra.mxu0 %v262_v3  ;;  %107 = vmatpush.msra.mxu1 %v262_v3 }
  0x20   :  { %197 = vmatpush.msra.mxu2 %v262_v3  ;;  %212 = vmatpush.msra.mxu3 %v262_v3 }
  0x21   :  { %82 = vmatpush.msra.mxu0 %v262_v3  ;;  %108 = vmatpush.msra.mxu1 %v262_v3 }
  0x22   :  { %198 = vmatpush.msra.mxu2 %v262_v3  ;;  %213 = vmatpush.msra.mxu3 %v262_v3 }
  0x23   :  { %83 = vmatpush.msra.mxu0 %v262_v3  ;;  %109 = vmatpush.msra.mxu1 %v262_v3 }
  0x24   :  { %214 = vmatpush.msra.mxu3 %v262_v3 }
  0x25   :  { %110 = vmatpush.msra.mxu1 %v262_v3 }
  0x75   :  { %v46_v7 = vpop.xlane.xlu0 %45  ;;  %v56_v9 = vpop.permute.xlu1 %55 }
  0x76   :  { %v48_v8 = vsub.f32 %v283_v0, %v46_v7  ;;  %vm60_vm0 = vcmp.eq.s32.totalorder %v53_v11, %v56_v9 }
  0x78   :  { %v93_v10 = vmul.f32 1.442695, %v48_v8  ;;  %87 = vmatmul.f32.vlgmr.msra.gmra.mxu2 %v48_v8 }
  0x7a   :  { %225 = vpow2.f32 %v93_v10 }
  0x7d   :  { %v44_v12 = vpop.xlane.xlu0 %43  ;;  %v59_v17 = vpop.permute.xlu1 %58 }
  0x7e   :  { %v47_v13 = vsub.f32 %v300_v4, %v44_v12  ;;  %vm61_vm1 = vcmp.eq.s32.totalorder %v53_v11, %v59_v17 }
  0x7f   :  { %v63_v19 = vsel %vm61_vm1, %v48_v8, 0.0 }
  0x80   :  { %v226_v14 = vpop.eup %225  ;;  %v91_v15 = vmul.f32 1.442695, %v47_v13  ;;  %84 = vmatmul.f32.vlgmr.msra.gmra.mxu0 %v47_v13  ;;  %v62_v16 = vsel %vm60_vm0, %v47_v13, 0.0 }
  0x81   :  { %114 = vmatmul.f32.vlgmr.msra.gmra.mxu3 %v226_v14  ;;  %64 = vadd.xlane.f32.xlu2 %v62_v16 }
  0x82   :  { %227 = vpow2.f32 %v91_v15 }
  0x88   :  { %v228_v18 = vpop.eup %227 }
  0x89   :  { %111 = vmatmul.f32.vlgmr.msra.gmra.mxu1 %v228_v18  ;;  %66 = vadd.xlane.f32.xlu2 %v63_v19 }
  0xf4   :  { %v65_v20 = vpop.xlane.xlu2 %64 }
  0xf5   :  { %v118_v30 = vmul.f32 0.9, %v65_v20 }
  0xfb   :  { %v88_v22 = vpop.f32.mrf.mxu2 }
  0xfc   :  { %v67_v24 = vpop.xlane.xlu2 %66  ;;  %v121_v26 = vmul.f32 0.00078125, %v88_v22 }
  0xfd   :  { %v85_v25 = vpop.f32.mrf.mxu0  ;;  %v119_v27 = vmul.f32 0.9, %v67_v24 }
  0xfe   :  { %v120_v28 = vmul.f32 0.00078125, %v85_v25 }
  0xff   :  { %v123_v33 = vadd.f32 %v121_v26, %v119_v27 }
 0x100   :  { %v122_v34 = vadd.f32 %v120_v28, %v118_v30 }
 0x104   :  { %v115_v21 = vpop.f32.mrf.mxu3 }
 0x105   :  { %229 = vlog2.f32 %v115_v21 }
 0x106   :  { %v112_v23 = vpop.f32.mrf.mxu1 }
 0x107   :  { %231 = vlog2.f32 %v112_v23 }
 0x108   :  { %233 = vrcp.f32 %v263_v40 }
 0x10b   :  { %v230_v29 = vpop.eup %229 }
 0x10c   :  { %v127_v31 = vmul.f32 0.6931472, %v230_v29 }
 0x10d   :  { %v232_v32 = vpop.eup %231 }
 0x10e   :  { %v125_v35 = vmul.f32 0.6931472, %v232_v32  ;;  %v129_v36 = vsub.f32 %v123_v33, %v127_v31  ;;  %v234_v41 = vpop.eup %233 }
 0x10f   :  { %v151_v42 = vmul.f32 16.0, %v234_v41  ;;  %vm155_vm3 = vweird.f32 %v234_v41 }
 0x110   :  { %v128_v37 = vsub.f32 %v122_v34, %v125_v35 }
 0x111   :  { %v152_v43 = vsub.f32 1.0, %v151_v42 }
 0x112   :  { %v131_v38 = vadd.f32 %v129_v36, %v128_v37 }
 0x113   :  { %v153_v47 = vmul.f32 %v234_v41, %v152_v43 }
 0x114   :  { %v139_v39 = vsel %vm138_vm2, %v131_v38, 0.0 }
 0x115   :  { %140 = vadd.xlane.f32.xlu0 %v139_v39  ;;  %v154_v50 = vadd.f32 %v234_v41, %v153_v47 }
 0x117   :  { %v156_v53 = vsel %vm155_vm3, %v234_v41, %v154_v50 }
 0x188   :  { %v141_v44 = vpop.xlane.xlu0 %140 }
 0x189   :  { %v142_v45 = vrot.slane %v141_v44, 4 }
 0x18b   :  { %v143_v46 = vadd.f32 %v142_v45, %v141_v44 }
 0x18d   :  { %v144_v48 = vrot.slane %v143_v46, 2 }
 0x18f   :  { %v145_v49 = vadd.f32 %v144_v48, %v143_v46 }
 0x191   :  { %v146_v51 = vrot.slane %v145_v49, 1 }
 0x193   :  { %v147_v52 = vadd.f32 %v146_v51, %v145_v49 }
 0x195   :  { %215 = vpush %v147_v52 }
 0x196   :  { %217 = vpush %v156_v53 }
 0x1c6   :  { %s216_s17 = spop %215 }
 0x1c7   :  { %s149_s21 = ssub.f32 0.0, %s216_s17  ;;  %s218_s22 = spop %217 }
 0x1c9   :  { %s158_s23 = smul.f32 %s218_s22, %s149_s21 }
 0x1cb   :  { %v159_v54 = vstv %s158_s23 }
 0x1cc   :  { %160 = vst [vmem:[#allocation3] sm:$0xff] %v159_v54 }
 0x1cd   :  { %171 = dma.vmem_to_hbm [thread:$0]  %s167_s1, 128, %s169_s20, [#allocation4]  }
 0x1ce   :  { %259 = dma.done.wait [#allocation4], 128  }
 0x1cf   :  { %260 = vsyncadd [#allocation4], 4294967168 }
 0x1d0   :  { %176 = vsyncpa [#allocation4], 1 }

</bundles_post_ra>
